<compile_context>
chip_gen: v7x
topology: tpu7x:2x2x1
jax: 0.10.0
libtpu: 0.0.40
codegen_flags: <defaults>
</compile_context>

<pallas_src>
import jax
import jax.numpy as jnp
from jax import lax
from jax.experimental import pallas as pl
from jax.experimental.pallas import tpu as pltpu


def _round_up(x, m):
    return ((x + m - 1) // m) * m


def autoencoder_kernel(x_ref, wg_ref, bg_ref, wh_ref, bh_ref, o_ref):
    # First layer: (tm, Qp) . (Kp, Qp)^T -> (tm, Kp); contract axis 1 of both.
    h = lax.dot_general(
        x_ref[...], wg_ref[...],
        dimension_numbers=(((1,), (1,)), ((), ())),
        preferred_element_type=jnp.float32,
    )
    h = jax.nn.sigmoid(h + bg_ref[...])          # bias (1, Kp) broadcasts; f32
    h = h.astype(jnp.bfloat16)                   # bf16 into the second MXU pass

    # Second layer: (tm, Kp) . (Qp, Kp)^T -> (tm, Qp); contract axis 1 of both.
    y = lax.dot_general(
        h, wh_ref[...],
        dimension_numbers=(((1,), (1,)), ((), ())),
        preferred_element_type=jnp.float32,
    )
    o_ref[...] = jax.nn.sigmoid(y + bh_ref[...]).astype(o_ref.dtype)


def autoencoder_forward(x, wg, bg, wh, bh, *, tm=256):
    """Forward pass of the AutoEncoder.

    x:  (B, Q) float   -- user vectors
    wg: (K, Q), bg: (K,)   -- g = nn.Linear(num_question, k)   (PyTorch layout)
    wh: (Q, K), bh: (Q,)   -- h = nn.Linear(k, num_question)   (PyTorch layout)
    Returns (B, Q) in x.dtype.
    """
    B, Q = x.shape
    K, Qw = wg.shape
    assert Qw == Q and wh.shape == (Q, K) and bg.shape == (K,) and bh.shape == (Q,)
    out_dtype = x.dtype

    # Pad feature / hidden dims to MXU-friendly multiples of 128. Zero padding
    # is exact: padded input columns meet zero wg columns, padded hidden units
    # meet zero wh columns, and padded output columns are sliced off.
    Qp = _round_up(Q, 128)
    Kp = _round_up(K, 128)

    # MXU-friendly batch tile; pad batch up to a multiple of it.
    tm_eff = min(tm, _round_up(B, 128))
    Bp = _round_up(B, tm_eff)

    if Bp != B or Qp != Q:
        x = jnp.pad(x, ((0, Bp - B), (0, Qp - Q)))
    if Qp != Q or Kp != K:
        wg = jnp.pad(wg, ((0, Kp - K), (0, Qp - Q)))
        wh = jnp.pad(wh, ((0, Qp - Q), (0, Kp - K)))
        bg = jnp.pad(bg, (0, Kp - K))
        bh = jnp.pad(bh, (0, Qp - Q))

    # bf16 matmul operands; f32 biases shaped (1, N) for lane broadcast.
    x_bf = x.astype(jnp.bfloat16)
    wg_bf = wg.astype(jnp.bfloat16)
    wh_bf = wh.astype(jnp.bfloat16)
    bg2 = bg.reshape(1, Kp).astype(jnp.float32)
    bh2 = bh.reshape(1, Qp).astype(jnp.float32)

    grid = (Bp // tm_eff,)
    out = pl.pallas_call(
        autoencoder_kernel,
        out_shape=jax.ShapeDtypeStruct((Bp, Qp), out_dtype),
        grid_spec=pltpu.PrefetchScalarGridSpec(
            num_scalar_prefetch=0,
            grid=grid,
            in_specs=[
                pl.BlockSpec((tm_eff, Qp), lambda i: (i, 0)),   # x tile over batch
                pl.BlockSpec((Kp, Qp), lambda i: (0, 0)),       # Wg (VMEM-resident)
                pl.BlockSpec((1, Kp), lambda i: (0, 0)),        # bg
                pl.BlockSpec((Qp, Kp), lambda i: (0, 0)),       # Wh (VMEM-resident)
                pl.BlockSpec((1, Qp), lambda i: (0, 0)),        # bh
            ],
            out_specs=pl.BlockSpec((tm_eff, Qp), lambda i: (i, 0)),
        ),
        compiler_params=pltpu.CompilerParams(
            dimension_semantics=("parallel",),   # shard batch across TCs (v7x)
        ),
    )(x_bf, wg_bf, bg2, wh_bf, bh2)

    if Bp != B or Qp != Q:
        out = out[:B, :Q]
    return out


if __name__ == "__main__":
    # Small, module-consistent shapes: num_question=300, k=100 (PyTorch default
    # k), batch=64.  Exercises the unaligned-padding path for B, Q and K.
    B, Q, K = 64, 300, 100

    key = jax.random.PRNGKey(0)
    kx, kwg, kbg, kwh, kbh = jax.random.split(key, 5)

    # Deterministic inputs / PyTorch-Linear-style init: U(-1/sqrt(fan_in), +).
    x = jax.random.uniform(kx, (B, Q), dtype=jnp.float32)            # user vectors
    bound_g = 1.0 / (Q ** 0.5)
    wg = jax.random.uniform(kwg, (K, Q), jnp.float32, -bound_g, bound_g)
    bg = jax.random.uniform(kbg, (K,), jnp.float32, -bound_g, bound_g)
    bound_h = 1.0 / (K ** 0.5)
    wh = jax.random.uniform(kwh, (Q, K), jnp.float32, -bound_h, bound_h)
    bh = jax.random.uniform(kbh, (Q,), jnp.float32, -bound_h, bound_h)

    out = autoencoder_forward(x, wg, bg, wh, bh)
    out = jax.block_until_ready(out)

    # Pure-JAX f32 reference; bf16 matmuls loosen tolerance to ~1e-2.
    ref = jax.nn.sigmoid(jax.nn.sigmoid(x @ wg.T + bg) @ wh.T + bh)
    assert out.shape == (B, Q) and out.dtype == jnp.float32
    assert jnp.allclose(out, ref, atol=3e-2, rtol=3e-2)

    print("KERNEL_OK")
</pallas_src>

<mosaic_0001>
module attributes {stable_mosaic.version = 11 : i64} {
  func.func @autoencoder_kernel(%arg0: i32, %arg1: memref<128x384xbf16, #tpu.memory_space<vmem>>, %arg2: memref<128x384xbf16, #tpu.memory_space<vmem>>, %arg3: memref<1x128xf32, #tpu.memory_space<vmem>>, %arg4: memref<384x128xbf16, #tpu.memory_space<vmem>>, %arg5: memref<1x384xf32, #tpu.memory_space<vmem>>, %arg6: memref<128x384xf32, #tpu.memory_space<vmem>>) attributes {dimension_semantics = [#tpu.dimension_semantics<parallel>], iteration_bounds = array<i64: 1>, scalar_prefetch = 0 : i64, scratch_operands = 0 : i64, tpu.core_type = #tpu.core_type<tc>, window_params = [{transform_indices = @transform_0, window_bounds = array<i64: 128, 384>}, {pipeline_mode = #tpu.pipeline_mode<synchronous>, transform_indices = @transform_1, window_bounds = array<i64: 128, 384>}, {pipeline_mode = #tpu.pipeline_mode<synchronous>, transform_indices = @transform_2, window_bounds = array<i64: 1, 128>}, {pipeline_mode = #tpu.pipeline_mode<synchronous>, transform_indices = @transform_3, window_bounds = array<i64: 384, 128>}, {pipeline_mode = #tpu.pipeline_mode<synchronous>, transform_indices = @transform_4, window_bounds = array<i64: 1, 384>}, {transform_indices = @transform_5, window_bounds = array<i64: 128, 384>}]} {
    %c0 = arith.constant 0 : index
    %c0_0 = arith.constant 0 : index
    %0 = vector.load %arg1[%c0, %c0_0] : memref<128x384xbf16, #tpu.memory_space<vmem>>, vector<128x384xbf16>
    %c0_1 = arith.constant 0 : index
    %c0_2 = arith.constant 0 : index
    %1 = vector.load %arg2[%c0_1, %c0_2] : memref<128x384xbf16, #tpu.memory_space<vmem>>, vector<128x384xbf16>
    %cst = arith.constant dense<0.000000e+00> : vector<128x128xf32>
    %2 = tpu.matmul %0, %1, %cst {dimension_numbers = #tpu.dot_dimension_numbers<[1], [1], [0], [0], [0, 0, 1, 0], [], []>} : vector<128x384xbf16>, vector<128x384xbf16>, vector<128x128xf32> -> vector<128x128xf32>
    %c0_3 = arith.constant 0 : index
    %c0_4 = arith.constant 0 : index
    %3 = vector.load %arg3[%c0_3, %c0_4] : memref<1x128xf32, #tpu.memory_space<vmem>>, vector<1x128xf32>
    %4 = vector.broadcast %3 : vector<1x128xf32> to vector<128x128xf32>
    %5 = arith.addf %2, %4 : vector<128x128xf32>
    %6 = arith.negf %5 : vector<128x128xf32>
    %7 = math.exp %6 : vector<128x128xf32>
    %cst_5 = arith.constant 1.000000e+00 : f32
    %8 = vector.broadcast %cst_5 : f32 to vector<128x128xf32>
    %9 = arith.addf %8, %7 : vector<128x128xf32>
    %10 = arith.divf %8, %9 : vector<128x128xf32>
    %11 = arith.truncf %10 : vector<128x128xf32> to vector<128x128xbf16>
    %c0_6 = arith.constant 0 : index
    %c0_7 = arith.constant 0 : index
    %12 = vector.load %arg4[%c0_6, %c0_7] : memref<384x128xbf16, #tpu.memory_space<vmem>>, vector<384x128xbf16>
    %cst_8 = arith.constant dense<0.000000e+00> : vector<128x384xf32>
    %13 = tpu.matmul %11, %12, %cst_8 {dimension_numbers = #tpu.dot_dimension_numbers<[1], [1], [0], [0], [0, 0, 1, 0], [], []>} : vector<128x128xbf16>, vector<384x128xbf16>, vector<128x384xf32> -> vector<128x384xf32>
    %c0_9 = arith.constant 0 : index
    %c0_10 = arith.constant 0 : index
    %14 = vector.load %arg5[%c0_9, %c0_10] : memref<1x384xf32, #tpu.memory_space<vmem>>, vector<1x384xf32>
    %15 = vector.broadcast %14 : vector<1x384xf32> to vector<128x384xf32>
    %16 = arith.addf %13, %15 : vector<128x384xf32>
    %17 = arith.negf %16 : vector<128x384xf32>
    %18 = math.exp %17 : vector<128x384xf32>
    %cst_11 = arith.constant 1.000000e+00 : f32
    %19 = vector.broadcast %cst_11 : f32 to vector<128x384xf32>
    %20 = arith.addf %19, %18 : vector<128x384xf32>
    %21 = arith.divf %19, %20 : vector<128x384xf32>
    %c0_12 = arith.constant 0 : index
    %c0_13 = arith.constant 0 : index
    %22 = vector.load %arg6[%c0_12, %c0_13] : memref<128x384xf32, #tpu.memory_space<vmem>>, vector<128x384xf32>
    tpu.vector_store %arg6[%c0_12, %c0_13], %21 {strides = array<i32>} : memref<128x384xf32, #tpu.memory_space<vmem>>, vector<128x384xf32>,
    return
  }
  func.func @transform_0(%arg0: i32) -> (i32, i32) {
    %c0_i32 = arith.constant 0 : i32
    %c0_i32_0 = arith.constant 0 : i32
    return %arg0, %c0_i32 : i32, i32
  }
  func.func @transform_1(%arg0: i32) -> (i32, i32) {
    %c0_i32 = arith.constant 0 : i32
    %c0_i32_0 = arith.constant 0 : i32
    %c0_i32_1 = arith.constant 0 : i32
    return %c0_i32, %c0_i32_0 : i32, i32
  }
  func.func @transform_2(%arg0: i32) -> (i32, i32) {
    %c0_i32 = arith.constant 0 : i32
    %c0_i32_0 = arith.constant 0 : i32
    %c0_i32_1 = arith.constant 0 : i32
    return %c0_i32, %c0_i32_0 : i32, i32
  }
  func.func @transform_3(%arg0: i32) -> (i32, i32) {
    %c0_i32 = arith.constant 0 : i32
    %c0_i32_0 = arith.constant 0 : i32
    %c0_i32_1 = arith.constant 0 : i32
    return %c0_i32, %c0_i32_0 : i32, i32
  }
  func.func @transform_4(%arg0: i32) -> (i32, i32) {
    %c0_i32 = arith.constant 0 : i32
    %c0_i32_0 = arith.constant 0 : i32
    %c0_i32_1 = arith.constant 0 : i32
    return %c0_i32, %c0_i32_0 : i32, i32
  }
  func.func @transform_5(%arg0: i32) -> (i32, i32) {
    %c0_i32 = arith.constant 0 : i32
    %c0_i32_0 = arith.constant 0 : i32
    return %arg0, %c0_i32 : i32, i32
  }
}

</mosaic_0001>

<bundles_post_ra>
// kernel: tpu_custom_call.1
= control target key start
LH: loop header
LB: loop body
LE: loop exit
PB: predicated region body
PF: predicated region fallthrough
CT: control target
= control target key end

     0   :  { %10 = vsyncpa [#allocation3], 0  ;;  %s2425_s0 = inlined_call_operand.hbm [shape: bf16[128,384], index: 0, kind: input, shape index: {}]   ;;  %s2426_s1 = inlined_call_operand.hbm [shape: bf16[128,384], index: 1, kind: input, shape index: {}]   ;;  %s2427_s2 = inlined_call_operand.vmem [shape: f32[1,128], index: 2, kind: input, shape index: {}]   ;;  %s2428_s3 = inlined_call_operand.hbm [shape: bf16[384,128], index: 3, kind: input, shape index: {}]   ;;  %s2429_s4 = inlined_call_operand.vmem [shape: f32[1,384], index: 4, kind: input, shape index: {}]   ;;  %s2430_s5 = inlined_call_operand.hbm [shape: f32[128,384], index: 5, kind: output, shape index: {}]  }
   0x1   :  { %11 = vsyncpa [#allocation6], 0 }
   0x2   :  { %12 = vsyncpa [#allocation4], 0  ;;  %s2174_s18 = smov [#allocation5]   ;;  %s2175_s20 = smov [#allocation2]  }
   0x3   :  { %s30_s19 = sshll.u32 %s2174_s18, 4  ;;  %s18_s21 = sshll.u32 %s2175_s20, 4  ;;  %s31_s19 = int_to_ptr.vmem [resolvable:$true] %s30_s19  ;;  %s2214_s21 = int_to_ptr.vmem [resolvable:$true] %s18_s21 }
   0x4   :  { %s2080_s24 = scalar_lea.hbm %s2426_s1, 3072 }
   0x5   :  { %p2081_p0 = scmp.ne.s32.totalorder %s2426_s1, %s2080_s24  ;;  %p2084_p1 = scmp.lt.u32.totalorder %s2080_s24, %s2426_s1 }
   0x7   :  { %p2086_p2 = pnand %p2084_p1, %p2081_p0 }
   0x9   :  { %2089 = shalt.err (!%p2086_p2)
}
   0xa   :  { %s2090_s29 = scalar_lea.vmem %s31_s19, 3072  ;;  %p2095_p4 = scmp.lt.s32.totalorder %s31_s19, %s31_s19 }
   0xb   :  { %p2091_p3 = scmp.ne.s32.totalorder %s31_s19, %s2090_s29  ;;  %p2096_p5 = scmp.lt.s32.totalorder %s2090_s29, %s2090_s29 }
   0xd   :  { %p2097_p6 = por %p2096_p5, %p2095_p4 }
   0xf   :  { %p2098_p7 = pnand %p2097_p6, %p2091_p3 }
  0x11   :  { %2101 = shalt.err (!%p2098_p7)
}
  0x12   :  { %s2176_s30 = smov 192   ;;  %s2177_s6 = smov 12  }
  0x13   :  { %36 = dma.hbm_to_vmem [thread:$0]  %s2426_s1, 3072, %s31_s19, [#allocation6], %s2176_s30, %s2176_s30, %s2177_s6  }
  0x14   :  { %s2102_s11 = scalar_lea.hbm %s2425_s0, 3072 }
  0x15   :  { %p2103_p8 = scmp.ne.s32.totalorder %s2425_s0, %s2102_s11  ;;  %p2106_p9 = scmp.lt.u32.totalorder %s2102_s11, %s2425_s0 }
  0x17   :  { %p2108_p10 = pnand %p2106_p9, %p2103_p8 }
  0x19   :  { %2111 = shalt.err (!%p2108_p10)
}
  0x1a   :  { %s2112_s16 = scalar_lea.vmem %s2214_s21, 3072  ;;  %p2117_p12 = scmp.lt.s32.totalorder %s2214_s21, %s2214_s21 }
  0x1b   :  { %p2113_p11 = scmp.ne.s32.totalorder %s2214_s21, %s2112_s16  ;;  %p2118_p13 = scmp.lt.s32.totalorder %s2112_s16, %s2112_s16 }
  0x1d   :  { %p2119_p0 = por %p2118_p13, %p2117_p12 }
  0x1f   :  { %p2120_p1 = pnand %p2119_p0, %p2113_p11 }
  0x21   :  { %2123 = shalt.err (!%p2120_p1)
}
  0x22   :  { %24 = dma.hbm_to_vmem [thread:$0]  %s2425_s0, 3072, %s2214_s21, [#allocation3], %s2176_s30, %s2176_s30, %s2177_s6  }
  0x23   :  { %s2178_s18 = smov [#allocation7]   ;;  %s2124_s23 = scalar_lea.hbm %s2428_s3, 3072 }
  0x24   :  { %s44_s19 = sshll.u32 %s2178_s18, 4  ;;  %p2125_p2 = scmp.ne.s32.totalorder %s2428_s3, %s2124_s23  ;;  %s45_s19 = int_to_ptr.vmem [resolvable:$true] %s44_s19 }
  0x25   :  { %p2128_p3 = scmp.lt.u32.totalorder %s2124_s23, %s2428_s3 }
  0x27   :  { %p2130_p4 = pnand %p2128_p3, %p2125_p2 }
  0x29   :  { %2133 = shalt.err (!%p2130_p4)
}
  0x2a   :  { %s2134_s28 = scalar_lea.vmem %s45_s19, 3072  ;;  %p2139_p6 = scmp.lt.s32.totalorder %s45_s19, %s45_s19 }
  0x2b   :  { %p2135_p5 = scmp.ne.s32.totalorder %s45_s19, %s2134_s28  ;;  %p2140_p7 = scmp.lt.s32.totalorder %s2134_s28, %s2134_s28 }
  0x2d   :  { %p2141_p8 = por %p2140_p7, %p2139_p6 }
  0x2f   :  { %p2142_p9 = pnand %p2141_p8, %p2135_p5 }
  0x31   :  { %2145 = shalt.err (!%p2142_p9)
}
  0x32   :  { %s2179_s0 = smov 64   ;;  %s2180_s21 = smov 4  }
  0x33   :  { %50 = dma.hbm_to_vmem [thread:$0]  %s2428_s3, 3072, %s45_s19, [#allocation6], %s2179_s0, %s2179_s0, %s2180_s21  }
  0x34   :  { %2168 = dma.done.wait [#allocation3], 3072  }
  0x35   :  { %2169 = vsyncadd [#allocation3], 4294964224 }
  0x36   :  { %2170 = dma.done.wait [#allocation6], 6144  }
  0x37   :  { %2171 = vsyncadd [#allocation6], 4294961152  ;;  %v1736_v0 = vld [vmem:[#allocation5 + $0x4] ss:$12 sps:$4 sm:$0xff]   ;;  %v1738_v1 = vld [vmem:[#allocation5 + $0x8] ss:$12 sps:$4 sm:$0xff]  }
  0x38   :  { %390 = vmatprep.subr.bf16.mxu0 %v1736_v0  ;;  %v1739_v2 = vld [vmem:[#allocation5] ss:$12 sps:$4 sm:$0xff]   ;;  %1662 = vmatprep.subr.bf16.mxu1 %v1738_v1  ;;  %v1740_v3 = vld [vmem:[#allocation5 + $0x1c] ss:$12 sps:$4 sm:$0xff]   ;;  %v1743_v5 = vld [vmem:[#allocation5 + $0x18] ss:$12 sps:$4 sm:$0xff]  }
  0x39   :  { %391 = vmatpush1.bf16.xpose.msra.mxu0 %v1739_v2  ;;  %1663 = vmatpush3.bf16.xpose.msra.mxu1 %v1738_v1  ;;  %v1742_v4 = vld [vmem:[#allocation5 + $0x20] ss:$12 sps:$4 sm:$0xff]   ;;  %v1746_v7 = vld [vmem:[#allocation5 + $0x38] ss:$12 sps:$4 sm:$0xff]   ;;  %v1747_v8 = vld [vmem:[#allocation5 + $0x30] ss:$12 sps:$4 sm:$0xff]  }
  0x3a   :  { %392 = vmatprep.subr.bf16.mxu0 %v1740_v3  ;;  %1664 = vmatprep.subr.bf16.mxu1 %v1742_v4  ;;  %v1744_v6 = vld [vmem:[#allocation5 + $0x34] ss:$12 sps:$4 sm:$0xff]   ;;  %v1748_v9 = vld [vmem:[#allocation5 + $0x4c] ss:$12 sps:$4 sm:$0xff]   ;;  %v1750_v10 = vld [vmem:[#allocation5 + $0x50] ss:$12 sps:$4 sm:$0xff]  }
  0x3b   :  { %v1770_v11 = vld [vmem:[#allocation2 + $0x4] ss:$12 sps:$4 sm:$0xff]   ;;  %v1771_v12 = vld [vmem:[#allocation2 + $0x8] ss:$12 sps:$4 sm:$0xff]   ;;  %v1755_v16 = vld [vmem:[#allocation5 + $0x60] ss:$12 sps:$4 sm:$0xff]  }
  0x3c   :  { %422 = vmatprep.mubr.bf16.mxu0 %v1770_v11  ;;  %1678 = vmatprep.mubr.bf16.mxu1 %v1771_v12  ;;  %v1751_v13 = vld [vmem:[#allocation5 + $0x48] ss:$12 sps:$4 sm:$0xff]   ;;  %v1752_v14 = vld [vmem:[#allocation5 + $0x64] ss:$12 sps:$4 sm:$0xff]   ;;  %v1758_v18 = vld [vmem:[#allocation5 + $0x80] ss:$12 sps:$4 sm:$0xff]  }
  0x3d   :  { %v1754_v15 = vld [vmem:[#allocation5 + $0x68] ss:$12 sps:$4 sm:$0xff]   ;;  %v1759_v19 = vld [vmem:[#allocation5 + $0x78] ss:$12 sps:$4 sm:$0xff]   ;;  %v1763_v22 = vld [vmem:[#allocation5 + $0x90] ss:$12 sps:$4 sm:$0xff]  }
  0x3e   :  { %v1756_v17 = vld [vmem:[#allocation5 + $0x7c] ss:$12 sps:$4 sm:$0xff]   ;;  %v1760_v20 = vld [vmem:[#allocation5 + $0x94] ss:$12 sps:$4 sm:$0xff]   ;;  %v1762_v21 = vld [vmem:[#allocation5 + $0x98] ss:$12 sps:$4 sm:$0xff]  }
  0x3f   :  { %v1764_v23 = vld [vmem:[#allocation5 + $0xac] ss:$12 sps:$4 sm:$0xff]   ;;  %v1766_v24 = vld [vmem:[#allocation5 + $0xb0] ss:$12 sps:$4 sm:$0xff]   ;;  %v1767_v25 = vld [vmem:[#allocation5 + $0xa8] ss:$12 sps:$4 sm:$0xff]  }
  0x40   :  { %v1800_v26 = vld [vmem:[#allocation7 + $0x40] sm:$0xff]   ;;  %v1773_v30 = vld [vmem:[#allocation2 + $0x1c] ss:$12 sps:$4 sm:$0xff]   ;;  %v1805_v40 = vld [vmem:[#allocation7 + $0x50] sm:$0xff]  }
  0x41   :  { %393 = vmatpush1.bf16.xpose.msra.mxu0 %v1743_v5  ;;  %1665 = vmatpush3.bf16.xpose.msra.mxu1 %v1742_v4  ;;  %v1803_v27 = vld [vmem:[#allocation7 + $0x80] sm:$0xff]   ;;  %v1802_v33 = vld [vmem:[#allocation7 + $0x48] sm:$0xff]   ;;  %v1777_v36 = vld [vmem:[#allocation2 + $0x50] ss:$12 sps:$4 sm:$0xff]  }
  0x42   :  { %394 = vmatprep.subr.bf16.mxu0 %v1744_v6  ;;  %1666 = vmatprep.subr.bf16.mxu1 %v1746_v7  ;;  %v1768_v28 = vld [vmem:[#allocation2] ss:$12 sps:$4 sm:$0xff]   ;;  %v1776_v31 = vld [vmem:[#allocation2 + $0x38] ss:$12 sps:$4 sm:$0xff]   ;;  %v1784_v38 = vld [vmem:[#allocation2 + $0x68] ss:$12 sps:$4 sm:$0xff]  }
  0x43   :  { %v1772_v29 = vld [vmem:[#allocation2 + $0x20] ss:$12 sps:$4 sm:$0xff]   ;;  %v1775_v35 = vld [vmem:[#allocation2 + $0x18] ss:$12 sps:$4 sm:$0xff]   ;;  %v1809_v41 = vld [vmem:[#allocation7 + $0x90] sm:$0xff]  }
  0x44   :  { %v1801_v32 = vld [vmem:[#allocation7] sm:$0xff]   ;;  %v1806_v34 = vld [vmem:[#allocation7 + $0x88] sm:$0xff]   ;;  %v1780_v42 = vld [vmem:[#allocation2 + $0x30] ss:$12 sps:$4 sm:$0xff]  }
  0x45   :  { %v1778_v37 = vld [vmem:[#allocation2 + $0x34] ss:$12 sps:$4 sm:$0xff]   ;;  %v1804_v39 = vld [vmem:[#allocation7 + $0x8] sm:$0xff]   ;;  %v1792_v45 = vld [vmem:[#allocation2 + $0x98] ss:$12 sps:$4 sm:$0xff]  }
  0x46   :  { %v1785_v43 = vld [vmem:[#allocation2 + $0x80] ss:$12 sps:$4 sm:$0xff]   ;;  %v1807_v46 = vld [vmem:[#allocation7 + $0x10] sm:$0xff]   ;;  %v1808_v47 = vld [vmem:[#allocation7 + $0x58] sm:$0xff]  }
  0x47   :  { %v1781_v44 = vld [vmem:[#allocation2 + $0x4c] ss:$12 sps:$4 sm:$0xff]   ;;  %v1783_v48 = vld [vmem:[#allocation2 + $0x48] ss:$12 sps:$4 sm:$0xff]   ;;  %v1793_v49 = vld [vmem:[#allocation2 + $0xb0] ss:$12 sps:$4 sm:$0xff]  }
  0x48   :  { %v1786_v50 = vld [vmem:[#allocation2 + $0x64] ss:$12 sps:$4 sm:$0xff]   ;;  %v1810_v51 = vld [vmem:[#allocation7 + $0x18] sm:$0xff]   ;;  %v1788_v52 = vld [vmem:[#allocation2 + $0x60] ss:$12 sps:$4 sm:$0xff]  }
  0x49   :  { %395 = vmatpush1.bf16.xpose.msra.mxu0 %v1747_v8  ;;  %1667 = vmatpush3.bf16.xpose.msra.mxu1 %v1746_v7  ;;  %v1789_v53 = vld [vmem:[#allocation2 + $0x7c] ss:$12 sps:$4 sm:$0xff]   ;;  %v1791_v54 = vld [vmem:[#allocation2 + $0x78] ss:$12 sps:$4 sm:$0xff]   ;;  %v1794_v55 = vld [vmem:[#allocation2 + $0x94] ss:$12 sps:$4 sm:$0xff]  }
  0x4a   :  { %396 = vmatprep.subr.bf16.mxu0 %v1748_v9  ;;  %1668 = vmatprep.subr.bf16.mxu1 %v1750_v10  ;;  %v1796_v56 = vld [vmem:[#allocation2 + $0x90] ss:$12 sps:$4 sm:$0xff]   ;;  %v1797_v57 = vld [vmem:[#allocation2 + $0xac] ss:$12 sps:$4 sm:$0xff]   ;;  %v1799_v58 = vld [vmem:[#allocation2 + $0xa8] ss:$12 sps:$4 sm:$0xff]  }
  0x4b   :  { %v1812_v59 = vld [vmem:[#allocation7 + $0x98] sm:$0xff]   ;;  %v1811_v60 = vld [vmem:[#allocation7 + $0x60] sm:$0xff]   ;;  %v1814_v63 = vld [vmem:[#allocation7 + $0x68] sm:$0xff]  }
  0x4c   :  { %v1813_v61 = vld [vmem:[#allocation7 + $0x20] sm:$0xff]   ;;  %v1816_v0 = vld [vmem:[#allocation7 + $0x28] sm:$0xff]   ;;  %v1817_v2 = vld [vmem:[#allocation7 + $0x70] sm:$0xff]  }
  0x4d   :  { %v1815_v62 = vld [vmem:[#allocation7 + $0xa0] sm:$0xff]   ;;  %v1818_v1 = vld [vmem:[#allocation7 + $0xa8] sm:$0xff]   ;;  %v1819_v3 = vld [vmem:[#allocation7 + $0x30] sm:$0xff]  }
  0x4e   :  { %v1821_v4 = vld [vmem:[#allocation7 + $0xb0] sm:$0xff]   ;;  %v1820_v5 = vld [vmem:[#allocation7 + $0x78] sm:$0xff]   ;;  %v2260_v8 = vld [vmem:[%s2427_s2] ss:$0 sm:$0xff] }
  0x4f   :  { %v1822_v6 = vld [vmem:[#allocation7 + $0x38] sm:$0xff]  }
  0x50   :  { %v1823_v7 = vld [vmem:[#allocation7 + $0xb8] sm:$0xff]  }
  0x51   :  { %397 = vmatpush1.bf16.xpose.msra.mxu0 %v1751_v13  ;;  %1669 = vmatpush3.bf16.xpose.msra.mxu1 %v1750_v10 }
  0x52   :  { %398 = vmatprep.subr.bf16.mxu0 %v1752_v14  ;;  %1670 = vmatprep.subr.bf16.mxu1 %v1754_v15 }
  0x59   :  { %399 = vmatpush1.bf16.xpose.msra.mxu0 %v1755_v16  ;;  %1671 = vmatpush3.bf16.xpose.msra.mxu1 %v1754_v15 }
  0x5a   :  { %400 = vmatprep.subr.bf16.mxu0 %v1756_v17  ;;  %1672 = vmatprep.subr.bf16.mxu1 %v1758_v18 }
  0x61   :  { %401 = vmatpush1.bf16.xpose.msra.mxu0 %v1759_v19  ;;  %1673 = vmatpush3.bf16.xpose.msra.mxu1 %v1758_v18 }
  0x62   :  { %402 = vmatprep.subr.bf16.mxu0 %v1760_v20  ;;  %1674 = vmatprep.subr.bf16.mxu1 %v1762_v21 }
  0x69   :  { %403 = vmatpush1.bf16.xpose.msra.mxu0 %v1763_v22  ;;  %1675 = vmatpush3.bf16.xpose.msra.mxu1 %v1762_v21 }
  0x6a   :  { %404 = vmatprep.subr.bf16.mxu0 %v1764_v23  ;;  %1676 = vmatprep.subr.bf16.mxu1 %v1766_v24 }
  0x71   :  { %405 = vmatpush1.bf16.xpose.msra.mxu0 %v1767_v25  ;;  %1677 = vmatpush3.bf16.xpose.msra.mxu1 %v1766_v24 }
  0x72   :  { %1614 = vmatprep.subr.bf16.mxu0 %v1800_v26  ;;  %1694 = vmatprep.subr.bf16.mxu1 %v1803_v27 }
  0x78   :  { %423 = vmatmul.mubr.bf16.vlgmr.msra.gmra.mrb[0].mxu0 %v1768_v28  ;;  %1679 = vmatmul.mubr.bf16.vlgmr.msra.gmra.mrb[0].mxu1 %v1772_v29 }
  0x79   :  { %430 = vmatprep.mubr.bf16.mxu0 %v1773_v30  ;;  %1682 = vmatprep.mubr.bf16.mxu1 %v1776_v31 }
  0x7a   :  { %1615 = vmatpush3.bf16.xpose.msra.mxu0 %v1801_v32  ;;  %1695 = vmatpush3.bf16.xpose.msra.mxu1 %v1803_v27 }
  0x7b   :  { %1616 = vmatprep.subr.bf16.mxu0 %v1802_v33  ;;  %1696 = vmatprep.subr.bf16.mxu1 %v1806_v34 }
  0x80   :  { %431 = vmatmul.mubr.bf16.gmra.mrb[4].mxu0 %v1775_v35  ;;  %1683 = vmatmul.mubr.bf16.gmra.mrb[4].mxu1 %v1777_v36 }
  0x81   :  { %438 = vmatprep.mubr.bf16.mxu0 %v1778_v37  ;;  %1686 = vmatprep.mubr.bf16.mxu1 %v1784_v38 }
  0x82   :  { %1617 = vmatpush3.bf16.xpose.msra.mxu0 %v1804_v39  ;;  %1697 = vmatpush3.bf16.xpose.msra.mxu1 %v1806_v34 }
  0x83   :  { %1618 = vmatprep.subr.bf16.mxu0 %v1805_v40  ;;  %1698 = vmatprep.subr.bf16.mxu1 %v1809_v41 }
  0x88   :  { %439 = vmatmul.mubr.bf16.gmra.mrb[8].mxu0 %v1780_v42  ;;  %1687 = vmatmul.mubr.bf16.gmra.mrb[8].mxu1 %v1785_v43 }
  0x89   :  { %446 = vmatprep.mubr.bf16.mxu0 %v1781_v44  ;;  %1690 = vmatprep.mubr.bf16.mxu1 %v1792_v45 }
  0x8a   :  { %1619 = vmatpush3.bf16.xpose.msra.mxu0 %v1807_v46  ;;  %1699 = vmatpush3.bf16.xpose.msra.mxu1 %v1809_v41 }
  0x8b   :  { %1620 = vmatprep.subr.bf16.mxu0 %v1808_v47  ;;  %1700 = vmatprep.subr.bf16.mxu1 %v1812_v59 }
  0x90   :  { %447 = vmatmul.mubr.bf16.gmra.mrb[12].mxu0 %v1783_v48  ;;  %1691 = vmatmul.mubr.bf16.gmra.mrb[12].mxu1 %v1793_v49 }
  0x91   :  { %454 = vmatprep.mubr.bf16.mxu0 %v1786_v50 }
  0x92   :  { %1621 = vmatpush3.bf16.xpose.msra.mxu0 %v1810_v51  ;;  %1701 = vmatpush3.bf16.xpose.msra.mxu1 %v1812_v59 }
  0x93   :  { %1622 = vmatprep.subr.bf16.mxu0 %v1811_v60  ;;  %1702 = vmatprep.subr.bf16.mxu1 %v1815_v62 }
  0x98   :  { %455 = vmatmul.mubr.bf16.gmra.mrb[16].mxu0 %v1788_v52 }
  0x99   :  { %462 = vmatprep.mubr.bf16.mxu0 %v1789_v53 }
  0x9a   :  { %1623 = vmatpush3.bf16.xpose.msra.mxu0 %v1813_v61  ;;  %1703 = vmatpush3.bf16.xpose.msra.mxu1 %v1815_v62 }
  0x9b   :  { %1624 = vmatprep.subr.bf16.mxu0 %v1814_v63  ;;  %1704 = vmatprep.subr.bf16.mxu1 %v1818_v1 }
  0xa0   :  { %463 = vmatmul.mubr.bf16.gmra.mrb[20].mxu0 %v1791_v54 }
  0xa1   :  { %470 = vmatprep.mubr.bf16.mxu0 %v1794_v55 }
  0xa2   :  { %1625 = vmatpush3.bf16.xpose.msra.mxu0 %v1816_v0  ;;  %1705 = vmatpush3.bf16.xpose.msra.mxu1 %v1818_v1 }
  0xa3   :  { %1626 = vmatprep.subr.bf16.mxu0 %v1817_v2  ;;  %1706 = vmatprep.subr.bf16.mxu1 %v1821_v4 }
  0xa8   :  { %471 = vmatmul.mubr.bf16.gmra.mrb[24].mxu0 %v1796_v56 }
  0xa9   :  { %478 = vmatprep.mubr.bf16.mxu0 %v1797_v57 }
  0xaa   :  { %1627 = vmatpush3.bf16.xpose.msra.mxu0 %v1819_v3  ;;  %1707 = vmatpush3.bf16.xpose.msra.mxu1 %v1821_v4 }
  0xab   :  { %1628 = vmatprep.subr.bf16.mxu0 %v1820_v5  ;;  %1708 = vmatprep.subr.bf16.mxu1 %v1823_v7 }
  0xb0   :  { %479 = vmatmul.mubr.bf16.gmra.mrb[28].mxu0 %v1799_v58 }
  0xb2   :  { %1629 = vmatpush3.bf16.xpose.msra.mxu0 %v1822_v6  ;;  %1709 = vmatpush3.bf16.xpose.msra.mxu1 %v1823_v7 }
 0x14b   :  { %v424_v9 = vpop.f32.mrb[0].mxu0  ;;  %v1680_v10 = vpop.f32.mrb[0].mxu1 }
 0x14c   :  { %v425_v11 = vadd.f32 %v2260_v8, %v424_v9  ;;  %v426_v12 = vpop.f32.mrb[1].mxu0  ;;  %v521_v13 = vpop.f32.mrb[1].mxu1 }
 0x14d   :  { %v427_v14 = vpop.f32.mrb[2].mxu0  ;;  %v1681_v15 = vpop.f32.mrb[2].mxu1 }
 0x14e   :  { %v522_v16 = vadd.f32 %v521_v13, %v425_v11  ;;  %v428_v17 = vadd.f32 %v2260_v8, %v427_v14  ;;  %v429_v18 = vpop.f32.mrb[3].mxu0  ;;  %v524_v19 = vpop.f32.mrb[3].mxu1 }
 0x150   :  { %v1510_v20 = vmul.f32 -1.442695, %v522_v16  ;;  %v525_v21 = vadd.f32 %v524_v19, %v428_v17 }
 0x152   :  { %1824 = vpow2.f32 %v1510_v20  ;;  %v1511_v22 = vmul.f32 -1.442695, %v525_v21 }
 0x153   :  { %v432_v23 = vpop.f32.mrb[4].mxu0  ;;  %v1684_v24 = vpop.f32.mrb[4].mxu1 }
 0x154   :  { %1826 = vpow2.f32 %v1511_v22  ;;  %v433_v25 = vadd.f32 %v2260_v8, %v432_v23  ;;  %v434_v26 = vpop.f32.mrb[5].mxu0  ;;  %v537_v27 = vpop.f32.mrb[5].mxu1 }
 0x155   :  { %v435_v28 = vpop.f32.mrb[6].mxu0  ;;  %v1685_v29 = vpop.f32.mrb[6].mxu1 }
 0x156   :  { %v530_v30 = vadd.f32 %v1680_v10, %v433_v25  ;;  %v436_v31 = vadd.f32 %v2260_v8, %v435_v28  ;;  %v437_v32 = vpop.f32.mrb[7].mxu0  ;;  %v540_v33 = vpop.f32.mrb[7].mxu1 }
 0x158   :  { %v1512_v34 = vmul.f32 -1.442695, %v530_v30  ;;  %v533_v35 = vadd.f32 %v1681_v15, %v436_v31 }
 0x15a   :  { %1828 = vpow2.f32 %v1512_v34  ;;  %v1513_v36 = vmul.f32 -1.442695, %v533_v35 }
 0x15b   :  { %v440_v37 = vpop.f32.mrb[8].mxu0  ;;  %v2266_v38 = vpop.f32.mrb[8].mxu1 }
 0x15c   :  { %v1825_v39 = vpop.eup %1824  ;;  %1830 = vpow2.f32 %v1513_v36  ;;  %v441_v40 = vadd.f32 %v2260_v8, %v440_v37  ;;  %v442_v41 = vpop.f32.mrb[9].mxu0 }
 0x15d   :  { %v553_v42 = vpop.f32.mrb[9].mxu1  ;;  %v632_v43 = vadd.f32 1.0, %v1825_v39  ;;  %v443_v44 = vpop.f32.mrb[10].mxu0 }
 0x15e   :  { %v2269_v45 = vpop.f32.mrb[10].mxu1  ;;  %v1827_v46 = vpop.eup %1826  ;;  %v538_v47 = vadd.f32 %v537_v27, %v441_v40  ;;  %v444_v48 = vadd.f32 %v2260_v8, %v443_v44 }
 0x15f   :  { %v445_v49 = vpop.f32.mrb[11].mxu0  ;;  %v556_v50 = vpop.f32.mrb[11].mxu1  ;;  %v633_v51 = vadd.f32 1.0, %v1827_v46  ;;  %1832 = vrcp.f32 %v632_v43 }
 0x160   :  { %v1514_v52 = vmul.f32 -1.442695, %v538_v47  ;;  %v541_v53 = vadd.f32 %v540_v33, %v444_v48 }
 0x161   :  { %1834 = vrcp.f32 %v633_v51 }
 0x162   :  { %1836 = vpow2.f32 %v1514_v52  ;;  %v1515_v54 = vmul.f32 -1.442695, %v541_v53 }
 0x163   :  { %v448_v55 = vpop.f32.mrb[12].mxu0  ;;  %v2272_v56 = vpop.f32.mrb[12].mxu1 }
 0x164   :  { %v1829_v57 = vpop.eup %1828  ;;  %1838 = vpow2.f32 %v1515_v54  ;;  %v449_v58 = vadd.f32 %v2260_v8, %v448_v55  ;;  %v450_v59 = vpop.f32.mrb[13].mxu0 }
 0x165   :  { %v2275_v60 = vpop.f32.mrb[13].mxu1  ;;  %v634_v61 = vadd.f32 1.0, %v1829_v57  ;;  %v451_v62 = vpop.f32.mrb[14].mxu0 }
 0x166   :  { %v2277_v63 = vpop.f32.mrb[14].mxu1  ;;  %v1831_v0 = vpop.eup %1830  ;;  %v546_v1 = vadd.f32 %v1684_v24, %v449_v58  ;;  %v452_v2 = vadd.f32 %v2260_v8, %v451_v62 }
 0x167   :  { %v453_v3 = vpop.f32.mrb[15].mxu0  ;;  %v2280_v4 = vpop.f32.mrb[15].mxu1  ;;  %v635_v5 = vadd.f32 1.0, %v1831_v0  ;;  %1840 = vrcp.f32 %v634_v61 }
 0x168   :  { %v1516_v6 = vmul.f32 -1.442695, %v546_v1  ;;  %v549_v7 = vadd.f32 %v1685_v29, %v452_v2 }
 0x169   :  { %1842 = vrcp.f32 %v635_v5  ;;  %v1833_v9 = vpop.eup %1832 }
 0x16a   :  { %1844 = vpow2.f32 %v1516_v6  ;;  %v1517_v10 = vmul.f32 -1.442695, %v549_v7 }
 0x16b   :  { %v1835_v11 = vpop.eup %1834  ;;  %v456_v12 = vpop.f32.mrb[16].mxu0 }
 0x16c   :  { %v1837_v13 = vpop.eup %1836  ;;  %1846 = vpow2.f32 %v1517_v10  ;;  %v457_v14 = vadd.f32 %v2260_v8, %v456_v12  ;;  %v458_v15 = vpop.f32.mrb[17].mxu0  ;;  %v680_v16 = vpack.c.bf16 %v1835_v11, %v1833_v9 }
 0x16d   :  { %v636_v17 = vadd.f32 1.0, %v1837_v13  ;;  %v459_v18 = vpop.f32.mrb[18].mxu0 }
 0x16e   :  { %v1839_v19 = vpop.eup %1838  ;;  %v554_v20 = vadd.f32 %v553_v42, %v457_v14  ;;  %v460_v21 = vadd.f32 %v2260_v8, %v459_v18  ;;  %v461_v22 = vpop.f32.mrb[19].mxu0  ;;  %1630 = vmatprep.mubr.bf16.mxu0 %v680_v16  ;;  %1710 = vmatprep.mubr.bf16.mxu1 %v680_v16 }
 0x16f   :  { %v637_v23 = vadd.f32 1.0, %v1839_v19  ;;  %1631 = vmatmul.mubr.bf16.vlgmr.msra.gmra.mrb[32].mxu0 %v680_v16  ;;  %1848 = vrcp.f32 %v636_v17 }
 0x170   :  { %v1518_v24 = vmul.f32 -1.442695, %v554_v20  ;;  %v557_v25 = vadd.f32 %v556_v50, %v460_v21 }
 0x171   :  { %1850 = vrcp.f32 %v637_v23  ;;  %v1841_v26 = vpop.eup %1840 }
 0x172   :  { %1852 = vpow2.f32 %v1518_v24  ;;  %v1519_v27 = vmul.f32 -1.442695, %v557_v25 }
 0x173   :  { %v1843_v28 = vpop.eup %1842  ;;  %v464_v29 = vpop.f32.mrb[20].mxu0 }
 0x174   :  { %v1845_v30 = vpop.eup %1844  ;;  %1854 = vpow2.f32 %v1519_v27  ;;  %v465_v31 = vadd.f32 %v2260_v8, %v464_v29  ;;  %v466_v32 = vpop.f32.mrb[21].mxu0  ;;  %v681_v33 = vpack.c.bf16 %v1843_v28, %v1841_v26 }
 0x175   :  { %v638_v34 = vadd.f32 1.0, %v1845_v30  ;;  %v467_v35 = vpop.f32.mrb[22].mxu0 }
 0x176   :  { %v1847_v36 = vpop.eup %1846  ;;  %v562_v37 = vadd.f32 %v2266_v38, %v465_v31  ;;  %v468_v39 = vadd.f32 %v2260_v8, %v467_v35  ;;  %v469_v40 = vpop.f32.mrb[23].mxu0  ;;  %1632 = vmatprep.mubr.bf16.mxu0 %v681_v33  ;;  %1711 = vmatmul.mubr.bf16.vlgmr.msra.gmra.mrb[16].mxu1 %v681_v33 }
 0x177   :  { %v639_v41 = vadd.f32 1.0, %v1847_v36  ;;  %1633 = vmatmul.mubr.bf16.gmra.mrb[36].mxu0 %v681_v33  ;;  %1856 = vrcp.f32 %v638_v34  ;;  %v738_v34 = vlaneseq }
 0x178   :  { %v1520_v42 = vmul.f32 -1.442695, %v562_v37  ;;  %v565_v43 = vadd.f32 %v2269_v45, %v468_v39  ;;  %v736_v37 = vld [vmem:[%s2429_s4] sm:$0x7]  ;;  %s2181_s4 = smov [#allocation8]  }
 0x179   :  { %1858 = vrcp.f32 %v639_v41  ;;  %v1849_v44 = vpop.eup %1848  ;;  %v739_v35 = vshrl.u32 %v738_v34, 7  ;;  %s1448_s8 = sshll.u32 %s2181_s4, 4  ;;  %s1449_s8 = int_to_ptr.vmem [resolvable:$true] %s1448_s8 }
 0x17a   :  { %1860 = vpow2.f32 %v1520_v42  ;;  %v1521_v46 = vmul.f32 -1.442695, %v565_v43  ;;  %s2146_s9 = scalar_lea.vmem %s1449_s8, 6144  ;;  %p2151_p11 = scmp.lt.s32.totalorder %s1449_s8, %s1449_s8 }
 0x17b   :  { %v1851_v47 = vpop.eup %1850  ;;  %v472_v48 = vpop.f32.mrb[24].mxu0  ;;  %v740_v36 = vsub.s32 0, %v739_v35  ;;  %v744_v39 = vsub.s32 1, %v739_v35  ;;  %v748_v43 = vsub.s32 2, %v739_v35  ;;  %p2147_p10 = scmp.ne.s32.totalorder %s1449_s8, %s2146_s9  ;;  %p2152_p12 = scmp.lt.s32.totalorder %s2146_s9, %s2146_s9 }
 0x17c   :  { %v1853_v49 = vpop.eup %1852  ;;  %1862 = vpow2.f32 %v1521_v46  ;;  %v473_v38 = vadd.f32 %v2260_v8, %v472_v48  ;;  %v474_v50 = vpop.f32.mrb[25].mxu0  ;;  %v682_v51 = vpack.c.bf16 %v1851_v47, %v1849_v44 }
 0x17d   :  { %v640_v52 = vadd.f32 1.0, %v1853_v49  ;;  %v475_v53 = vpop.f32.mrb[26].mxu0  ;;  %v2299_v40 = vrot.slane %v736_v37, %v740_v36  ;;  %v2301_v41 = vrot.slane %v736_v37, %v744_v39  ;;  %p2153_p13 = por %p2152_p12, %p2151_p11 }
 0x17e   :  { %v1855_v54 = vpop.eup %1854  ;;  %v570_v55 = vadd.f32 %v2275_v60, %v473_v38  ;;  %v476_v57 = vadd.f32 %v2260_v8, %v475_v53  ;;  %v477_v45 = vpop.f32.mrb[27].mxu0  ;;  %1634 = vmatprep.mubr.bf16.mxu0 %v682_v51  ;;  %1714 = vmatprep.mubr.bf16.mxu1 %v682_v51  ;;  %v2307_v53 = vrot.slane %v736_v37, %v748_v43 }
 0x17f   :  { %v641_v58 = vadd.f32 1.0, %v1855_v54  ;;  %1635 = vmatmul.mubr.bf16.gmra.mrb[40].mxu0 %v682_v51  ;;  %1864 = vrcp.f32 %v640_v52  ;;  %p2154_p0 = pnand %p2153_p13, %p2147_p10 }
 0x180   :  { %v1522_v59 = vmul.f32 -1.442695, %v570_v55  ;;  %v573_v61 = vadd.f32 %v2280_v4, %v476_v57 }
 0x181   :  { %1866 = vrcp.f32 %v641_v58  ;;  %v1857_v62 = vpop.eup %1856 }
 0x182   :  { %1868 = vpow2.f32 %v1522_v59  ;;  %v1523_v0 = vmul.f32 -1.442695, %v573_v61 }
 0x183   :  { %v1859_v1 = vpop.eup %1858  ;;  %v480_v2 = vpop.f32.mrb[28].mxu0 }
 0x184   :  { %v1861_v3 = vpop.eup %1860  ;;  %1870 = vpow2.f32 %v1523_v0  ;;  %v481_v60 = vadd.f32 %v2260_v8, %v480_v2  ;;  %v482_v5 = vpop.f32.mrb[29].mxu0  ;;  %v683_v6 = vpack.c.bf16 %v1859_v1, %v1857_v62 }
 0x185   :  { %v642_v7 = vadd.f32 1.0, %v1861_v3  ;;  %v483_v9 = vpop.f32.mrb[30].mxu0 }
 0x186   :  { %v1863_v10 = vpop.eup %1862  ;;  %v578_v11 = vadd.f32 %v2272_v56, %v481_v60  ;;  %v484_v12 = vadd.f32 %v2260_v8, %v483_v9  ;;  %v485_v4 = vpop.f32.mrb[31].mxu0  ;;  %1636 = vmatprep.mubr.bf16.mxu0 %v683_v6  ;;  %1715 = vmatmul.mubr.bf16.gmra.mrb[20].mxu1 %v683_v6 }
 0x187   :  { %v643_v13 = vadd.f32 1.0, %v1863_v10  ;;  %1637 = vmatmul.mubr.bf16.gmra.mrb[44].mxu0 %v683_v6  ;;  %1872 = vrcp.f32 %v642_v7 }
 0x188   :  { %v1524_v14 = vmul.f32 -1.442695, %v578_v11  ;;  %v581_v15 = vadd.f32 %v2277_v63, %v484_v12 }
 0x189   :  { %1874 = vrcp.f32 %v643_v13  ;;  %v1865_v16 = vpop.eup %1864 }
 0x18a   :  { %1876 = vpow2.f32 %v1524_v14  ;;  %v1525_v17 = vmul.f32 -1.442695, %v581_v15 }
 0x18b   :  { %v1867_v18 = vpop.eup %1866 }
 0x18c   :  { %v1869_v19 = vpop.eup %1868  ;;  %1878 = vpow2.f32 %v1525_v17  ;;  %v684_v20 = vpack.c.bf16 %v1867_v18, %v1865_v16 }
 0x18d   :  { %v644_v56 = vadd.f32 1.0, %v1869_v19 }
 0x18e   :  { %v1871_v21 = vpop.eup %1870  ;;  %1638 = vmatprep.mubr.bf16.mxu0 %v684_v20  ;;  %1718 = vmatprep.mubr.bf16.mxu1 %v684_v20 }
 0x18f   :  { %v645_v8 = vadd.f32 1.0, %v1871_v21  ;;  %1639 = vmatmul.mubr.bf16.gmra.mrb[48].mxu0 %v684_v20  ;;  %1880 = vrcp.f32 %v644_v56 }
 0x191   :  { %1882 = vrcp.f32 %v645_v8  ;;  %v1873_v22 = vpop.eup %1872 }
 0x193   :  { %v1875_v23 = vpop.eup %1874 }
 0x194   :  { %v1877_v24 = vpop.eup %1876  ;;  %v685_v63 = vpack.c.bf16 %v1875_v23, %v1873_v22 }
 0x195   :  { %v646_v25 = vadd.f32 1.0, %v1877_v24 }
 0x196   :  { %v1879_v26 = vpop.eup %1878  ;;  %1640 = vmatprep.mubr.bf16.mxu0 %v685_v63  ;;  %1719 = vmatmul.mubr.bf16.gmra.mrb[24].mxu1 %v685_v63 }
 0x197   :  { %v647_v27 = vadd.f32 1.0, %v1879_v26  ;;  %1641 = vmatmul.mubr.bf16.gmra.mrb[52].mxu0 %v685_v63  ;;  %1884 = vrcp.f32 %v646_v25 }
 0x199   :  { %1886 = vrcp.f32 %v647_v27  ;;  %v1881_v28 = vpop.eup %1880 }
 0x19b   :  { %v1883_v29 = vpop.eup %1882 }
 0x19c   :  { %v686_v30 = vpack.c.bf16 %v1883_v29, %v1881_v28 }
 0x19e   :  { %1642 = vmatprep.mubr.bf16.mxu0 %v686_v30  ;;  %1722 = vmatprep.mubr.bf16.mxu1 %v686_v30 }
 0x19f   :  { %1643 = vmatmul.mubr.bf16.gmra.mrb[56].mxu0 %v686_v30 }
 0x1a1   :  { %v1885_v31 = vpop.eup %1884 }
 0x1a3   :  { %v1887_v32 = vpop.eup %1886 }
 0x1a4   :  { %v687_v33 = vpack.c.bf16 %v1887_v32, %v1885_v31 }
 0x1a6   :  { %1644 = vmatprep.mubr.bf16.mxu0 %v687_v33  ;;  %1723 = vmatmul.mubr.bf16.gmra.mrb[28].mxu1 %v687_v33 }
 0x1a7   :  { %1645 = vmatmul.mubr.bf16.gmra.mrb[60].mxu0 %v687_v33 }
 0x242   :  { %v931_v42 = vpop.f32.mrb[32].mxu0 }
 0x243   :  { %v932_v44 = vadd.f32 %v931_v42, %v2299_v40  ;;  %v933_v46 = vpop.f32.mrb[33].mxu0 }
 0x244   :  { %v934_v47 = vadd.f32 %v933_v46, %v2301_v41  ;;  %v935_v48 = vpop.f32.mrb[34].mxu0 }
 0x245   :  { %v1550_v49 = vmul.f32 -1.442695, %v932_v44  ;;  %v936_v38 = vadd.f32 %v935_v48, %v2299_v40  ;;  %v937_v50 = vpop.f32.mrb[35].mxu0 }
 0x246   :  { %v1551_v51 = vmul.f32 -1.442695, %v934_v47  ;;  %v938_v52 = vadd.f32 %v937_v50, %v2301_v41 }
 0x247   :  { %1888 = vpow2.f32 %v1550_v49  ;;  %v1553_v54 = vmul.f32 -1.442695, %v936_v38 }
 0x248   :  { %1890 = vpow2.f32 %v1551_v51  ;;  %v1554_v55 = vmul.f32 -1.442695, %v938_v52 }
 0x249   :  { %1892 = vpow2.f32 %v1553_v54  ;;  %v1712_v57 = vpop.f32.mrb[16].mxu1 }
 0x24a   :  { %1894 = vpow2.f32 %v1554_v55  ;;  %v1053_v45 = vadd.f32 %v1712_v57, %v2307_v53  ;;  %v941_v58 = vpop.f32.mrb[36].mxu0  ;;  %v1044_v59 = vpop.f32.mrb[17].mxu1 }
 0x24b   :  { %v942_v61 = vadd.f32 %v941_v58, %v2299_v40  ;;  %v1045_v62 = vadd.f32 %v1044_v59, %v2307_v53  ;;  %v943_v0 = vpop.f32.mrb[37].mxu0  ;;  %v1713_v1 = vpop.f32.mrb[18].mxu1 }
 0x24c   :  { %v1558_v2 = vmul.f32 -1.442695, %v1053_v45  ;;  %v944_v3 = vadd.f32 %v943_v0, %v2301_v41  ;;  %v1056_v60 = vadd.f32 %v1713_v1, %v2307_v53  ;;  %v945_v5 = vpop.f32.mrb[38].mxu0  ;;  %v1047_v6 = vpop.f32.mrb[19].mxu1 }
 0x24d   :  { %v1556_v7 = vmul.f32 -1.442695, %v942_v61  ;;  %v1552_v9 = vmul.f32 -1.442695, %v1045_v62  ;;  %v946_v10 = vadd.f32 %v945_v5, %v2299_v40  ;;  %v947_v11 = vpop.f32.mrb[39].mxu0  ;;  %v1048_v14 = vadd.f32 %v1047_v6, %v2307_v53 }
 0x24e   :  { %1896 = vpow2.f32 %v1558_v2  ;;  %v1557_v12 = vmul.f32 -1.442695, %v944_v3  ;;  %v1561_v4 = vmul.f32 -1.442695, %v1056_v60  ;;  %v948_v16 = vadd.f32 %v947_v11, %v2301_v41 }
 0x24f   :  { %1898 = vpow2.f32 %v1556_v7  ;;  %v1559_v13 = vmul.f32 -1.442695, %v946_v10  ;;  %v1555_v24 = vmul.f32 -1.442695, %v1048_v14 }
 0x250   :  { %1900 = vpow2.f32 %v1552_v9  ;;  %v1560_v26 = vmul.f32 -1.442695, %v948_v16 }
 0x251   :  { %v1889_v15 = vpop.eup %1888  ;;  %1902 = vpow2.f32 %v1557_v12 }
 0x252   :  { %v1891_v17 = vpop.eup %1890  ;;  %v1251_v18 = vadd.f32 1.0, %v1889_v15  ;;  %1904 = vpow2.f32 %v1561_v4  ;;  %v951_v19 = vpop.f32.mrb[40].mxu0 }
 0x253   :  { %v1893_v20 = vpop.eup %1892  ;;  %v1252_v56 = vadd.f32 1.0, %v1891_v17  ;;  %1906 = vpow2.f32 %v1559_v13  ;;  %v952_v21 = vadd.f32 %v951_v19, %v2299_v40  ;;  %v953_v8 = vpop.f32.mrb[41].mxu0 }
 0x254   :  { %v1895_v22 = vpop.eup %1894  ;;  %1908 = vrcp.f32 %v1251_v18  ;;  %v1254_v23 = vadd.f32 1.0, %v1893_v20  ;;  %v955_v63 = vpop.f32.mrb[42].mxu0  ;;  %v954_v32 = vadd.f32 %v953_v8, %v2301_v41 }
 0x255   :  { %1910 = vrcp.f32 %v1252_v56  ;;  %v1255_v25 = vadd.f32 1.0, %v1895_v22  ;;  %v957_v27 = vpop.f32.mrb[43].mxu0  ;;  %v1562_v28 = vmul.f32 -1.442695, %v952_v21  ;;  %v956_v36 = vadd.f32 %v955_v63, %v2299_v40 }
 0x256   :  { %1912 = vrcp.f32 %v1254_v23  ;;  %v958_v44 = vadd.f32 %v957_v27, %v2301_v41  ;;  %v1563_v55 = vmul.f32 -1.442695, %v954_v32 }
 0x257   :  { %1914 = vrcp.f32 %v1255_v25  ;;  %v1565_v59 = vmul.f32 -1.442695, %v956_v36 }
 0x258   :  { %v1897_v29 = vpop.eup %1896  ;;  %1916 = vpow2.f32 %v1555_v24  ;;  %v1566_v62 = vmul.f32 -1.442695, %v958_v44 }
 0x259   :  { %v1899_v30 = vpop.eup %1898  ;;  %v1259_v31 = vadd.f32 1.0, %v1897_v29  ;;  %1918 = vpow2.f32 %v1560_v26  ;;  %v1716_v33 = vpop.f32.mrb[20].mxu1 }
 0x25a   :  { %v1901_v34 = vpop.eup %1900  ;;  %v1257_v35 = vadd.f32 1.0, %v1899_v30  ;;  %1920 = vpow2.f32 %v1562_v28  ;;  %v961_v37 = vpop.f32.mrb[44].mxu0  ;;  %v1069_v38 = vadd.f32 %v1716_v33, %v2307_v53 }
 0x25b   :  { %v1060_v39 = vpop.f32.mrb[21].mxu1  ;;  %v1903_v42 = vpop.eup %1902  ;;  %1922 = vrcp.f32 %v1259_v31  ;;  %v1253_v43 = vadd.f32 1.0, %v1901_v34  ;;  %v962_v2 = vadd.f32 %v961_v37, %v2299_v40 }
 0x25c   :  { %v963_v46 = vpop.f32.mrb[45].mxu0  ;;  %v1717_v47 = vpop.f32.mrb[22].mxu1  ;;  %1924 = vrcp.f32 %v1257_v35  ;;  %v1258_v49 = vadd.f32 1.0, %v1903_v42  ;;  %v1570_v1 = vmul.f32 -1.442695, %v1069_v38  ;;  %v1061_v60 = vadd.f32 %v1060_v39, %v2307_v53 }
 0x25d   :  { %v1905_v48 = vpop.eup %1904  ;;  %v965_v50 = vpop.f32.mrb[46].mxu0  ;;  %1926 = vrcp.f32 %v1253_v43  ;;  %v964_v6 = vadd.f32 %v963_v46, %v2301_v41  ;;  %v1072_v11 = vadd.f32 %v1717_v47, %v2307_v53  ;;  %v1568_v14 = vmul.f32 -1.442695, %v962_v2 }
 0x25e   :  { %v1063_v51 = vpop.f32.mrb[23].mxu1  ;;  %v1907_v52 = vpop.eup %1906  ;;  %v1262_v54 = vadd.f32 1.0, %v1905_v48  ;;  %1928 = vrcp.f32 %v1258_v49  ;;  %v966_v15 = vadd.f32 %v965_v50, %v2299_v40  ;;  %v1564_v19 = vmul.f32 -1.442695, %v1061_v60 }
 0x25f   :  { %v967_v57 = vpop.f32.mrb[47].mxu0  ;;  %v1909_v45 = vpop.eup %1908  ;;  %v1260_v58 = vadd.f32 1.0, %v1907_v52  ;;  %v1064_v20 = vadd.f32 %v1063_v51, %v2307_v53  ;;  %v1569_v8 = vmul.f32 -1.442695, %v964_v6  ;;  %v1573_v23 = vmul.f32 -1.442695, %v1072_v11 }
 0x260   :  { %v1911_v61 = vpop.eup %1910  ;;  %1395 = vst [vmem:[#allocation8] sm:$0xff] %v1909_v45  ;;  %1930 = vrcp.f32 %v1262_v54  ;;  %v1571_v63 = vmul.f32 -1.442695, %v966_v15  ;;  %v968_v29 = vadd.f32 %v967_v57, %v2301_v41 }
 0x261   :  { %v1913_v0 = vpop.eup %1912  ;;  %1396 = vst [vmem:[#allocation8 + $0x8] sm:$0xff] %v1911_v61  ;;  %1932 = vrcp.f32 %v1260_v58  ;;  %v1567_v26 = vmul.f32 -1.442695, %v1064_v20 }
 0x262   :  { %v1915_v3 = vpop.eup %1914  ;;  %1398 = vst [vmem:[#allocation8 + $0x18] sm:$0xff] %v1913_v0  ;;  %1934 = vpow2.f32 %v1563_v55  ;;  %v971_v7 = vpop.f32.mrb[48].mxu0  ;;  %v1572_v38 = vmul.f32 -1.442695, %v968_v29 }
 0x263   :  { %v1917_v5 = vpop.eup %1916  ;;  %1399 = vst [vmem:[#allocation8 + $0x20] sm:$0xff] %v1915_v3  ;;  %1936 = vpow2.f32 %v1565_v59  ;;  %v973_v12 = vpop.f32.mrb[49].mxu0  ;;  %v972_v33 = vadd.f32 %v971_v7, %v2299_v40 }
 0x264   :  { %v1919_v9 = vpop.eup %1918  ;;  %v1256_v10 = vadd.f32 1.0, %v1917_v5  ;;  %1938 = vpow2.f32 %v1566_v62  ;;  %v2327_v16 = vpop.f32.mrb[50].mxu0  ;;  %v974_v39 = vadd.f32 %v973_v12, %v2301_v41 }
 0x265   :  { %v1921_v4 = vpop.eup %1920  ;;  %v1261_v13 = vadd.f32 1.0, %v1919_v9  ;;  %1940 = vpow2.f32 %v1570_v1  ;;  %v2330_v56 = vpop.f32.mrb[51].mxu0  ;;  %v1574_v52 = vmul.f32 -1.442695, %v972_v33  ;;  %v976_v0 = vadd.f32 %v2327_v16, %v2299_v40 }
 0x266   :  { %v1923_v17 = vpop.eup %1922  ;;  %1942 = vrcp.f32 %v1256_v10  ;;  %v1263_v18 = vadd.f32 1.0, %v1921_v4  ;;  %v1575_v55 = vmul.f32 -1.442695, %v974_v39  ;;  %v978_v5 = vadd.f32 %v2330_v56, %v2301_v41 }
 0x267   :  { %v1925_v21 = vpop.eup %1924  ;;  %1403 = vst [vmem:[#allocation8 + $0x40] sm:$0xff] %v1923_v17  ;;  %1944 = vrcp.f32 %v1261_v13 }
 0x268   :  { %v1927_v22 = vpop.eup %1926  ;;  %1401 = vst [vmem:[#allocation8 + $0x30] sm:$0xff] %v1925_v21  ;;  %1946 = vrcp.f32 %v1263_v18  ;;  %v1578_v21 = vmul.f32 -1.442695, %v978_v5 }
 0x269   :  { %v1929_v24 = vpop.eup %1928  ;;  %1397 = vst [vmem:[#allocation8 + $0x10] sm:$0xff] %v1927_v22  ;;  %1948 = vpow2.f32 %v1568_v14  ;;  %v1720_v27 = vpop.f32.mrb[24].mxu1 }
 0x26a   :  { %v1931_v25 = vpop.eup %1930  ;;  %1402 = vst [vmem:[#allocation8 + $0x38] sm:$0xff] %v1929_v24  ;;  %1950 = vpow2.f32 %v1564_v19  ;;  %v981_v30 = vpop.f32.mrb[52].mxu0  ;;  %v1085_v11 = vadd.f32 %v1720_v27, %v2307_v53  ;;  %v1577_v19 = vmul.f32 -1.442695, %v976_v0 }
 0x26b   :  { %v1933_v28 = vpop.eup %1932  ;;  %1406 = vst [vmem:[#allocation8 + $0x58] sm:$0xff] %v1931_v25  ;;  %1952 = vpow2.f32 %v1569_v8  ;;  %v2333_v31 = vpop.f32.mrb[25].mxu1  ;;  %v982_v15 = vadd.f32 %v981_v30, %v2299_v40 }
 0x26c   :  { %v1935_v32 = vpop.eup %1934  ;;  %1404 = vst [vmem:[#allocation8 + $0x48] sm:$0xff] %v1933_v28  ;;  %1954 = vpow2.f32 %v1573_v23  ;;  %v2336_v34 = vpop.f32.mrb[53].mxu0  ;;  %v1582_v22 = vmul.f32 -1.442695, %v1085_v11  ;;  %v1077_v23 = vadd.f32 %v2333_v31, %v2307_v53 }
 0x26d   :  { %v2338_v35 = vpop.f32.mrb[26].mxu1  ;;  %v1937_v36 = vpop.eup %1936  ;;  %v1264_v37 = vadd.f32 1.0, %v1935_v32  ;;  %1956 = vpow2.f32 %v1571_v63  ;;  %v1580_v25 = vmul.f32 -1.442695, %v982_v15 }
 0x26e   :  { %v2341_v42 = vpop.f32.mrb[54].mxu0  ;;  %v2343_v43 = vpop.f32.mrb[27].mxu1  ;;  %v1266_v46 = vadd.f32 1.0, %v1937_v36  ;;  %1958 = vpow2.f32 %v1567_v26  ;;  %v984_v26 = vadd.f32 %v2336_v34, %v2301_v41  ;;  %v1088_v34 = vadd.f32 %v2338_v35, %v2307_v53 }
 0x26f   :  { %v1939_v44 = vpop.eup %1938  ;;  %v987_v47 = vpop.f32.mrb[55].mxu0  ;;  %1960 = vrcp.f32 %v1264_v37 }
 0x270   :  { %v1941_v48 = vpop.eup %1940  ;;  %v1267_v49 = vadd.f32 1.0, %v1939_v44  ;;  %1962 = vrcp.f32 %v1266_v46  ;;  %v2346_v57 = vadd.f32 %v987_v47, %v2301_v41  ;;  %v1581_v35 = vmul.f32 -1.442695, %v984_v26 }
 0x271   :  { %v1943_v50 = vpop.eup %1942  ;;  %v1271_v51 = vadd.f32 1.0, %v1941_v48 }
 0x272   :  { %v1945_v54 = vpop.eup %1944  ;;  %1400 = vst [vmem:[#allocation8 + $0x28] sm:$0xff] %v1943_v50  ;;  %1964 = vrcp.f32 %v1267_v49  ;;  %v991_v59 = vpop.f32.mrb[56].mxu0  ;;  %v986_v50 = vadd.f32 %v2341_v42, %v2299_v40  ;;  %v1585_v42 = vmul.f32 -1.442695, %v1088_v34 }
 0x273   :  { %v1947_v45 = vpop.eup %1946  ;;  %1405 = vst [vmem:[#allocation8 + $0x50] sm:$0xff] %v1945_v54  ;;  %1966 = vrcp.f32 %v1271_v51  ;;  %v2351_v1 = vadd.f32 %v991_v59, %v2299_v40  ;;  %v993_v2 = vpop.f32.mrb[57].mxu0 }
 0x274   :  { %v1949_v58 = vpop.eup %1948  ;;  %1407 = vst [vmem:[#allocation8 + $0x60] sm:$0xff] %v1947_v45  ;;  %1968 = vpow2.f32 %v1572_v38  ;;  %v2356_v6 = vadd.f32 %v993_v2, %v2301_v41  ;;  %v995_v7 = vpop.f32.mrb[58].mxu0  ;;  %v1576_v38 = vmul.f32 -1.442695, %v1077_v23 }
 0x275   :  { %v1951_v61 = vpop.eup %1950  ;;  %v1269_v62 = vadd.f32 1.0, %v1949_v58  ;;  %1970 = vpow2.f32 %v1574_v52  ;;  %v2360_v12 = vadd.f32 %v995_v7, %v2299_v40  ;;  %v997_v4 = vpop.f32.mrb[59].mxu0 }
 0x276   :  { %v1953_v3 = vpop.eup %1952  ;;  %v1265_v60 = vadd.f32 1.0, %v1951_v61  ;;  %1972 = vpow2.f32 %v1575_v55  ;;  %v2364_v16 = vadd.f32 %v997_v4, %v2301_v41  ;;  %v1080_v55 = vadd.f32 %v2343_v43, %v2307_v53 }
 0x277   :  { %v1955_v9 = vpop.eup %1954  ;;  %1974 = vrcp.f32 %v1269_v62  ;;  %v1270_v10 = vadd.f32 1.0, %v1953_v3  ;;  %v1583_v43 = vmul.f32 -1.442695, %v986_v50 }
 0x278   :  { %v1957_v13 = vpop.eup %1956  ;;  %1976 = vrcp.f32 %v1265_v60  ;;  %v1274_v14 = vadd.f32 1.0, %v1955_v9  ;;  %v1579_v60 = vmul.f32 -1.442695, %v1080_v55  ;;  %v1590_v26 = vmul.f32 -1.442695, %v2364_v16 }
 0x279   :  { %v1959_v17 = vpop.eup %1958  ;;  %1978 = vrcp.f32 %v1270_v10  ;;  %v1272_v18 = vadd.f32 1.0, %v1957_v13  ;;  %v1724_v24 = vpop.f32.mrb[28].mxu1 }
 0x27a   :  { %v1961_v20 = vpop.eup %1960  ;;  %1980 = vrcp.f32 %v1274_v14  ;;  %v1268_v56 = vadd.f32 1.0, %v1959_v17  ;;  %v2371_v27 = vadd.f32 %v1724_v24, %v2307_v53  ;;  %v1001_v28 = vpop.f32.mrb[60].mxu0  ;;  %v1586_v14 = vmul.f32 -1.442695, %v2351_v1 }
 0x27b   :  { %v1963_v8 = vpop.eup %1962  ;;  %1408 = vst [vmem:[#allocation8 + $0x68] sm:$0xff] %v1961_v20  ;;  %1982 = vrcp.f32 %v1272_v18  ;;  %v1092_v29 = vpop.f32.mrb[29].mxu1  ;;  %v2374_v32 = vadd.f32 %v1001_v28, %v2299_v40  ;;  %v1587_v17 = vmul.f32 -1.442695, %v2356_v6 }
 0x27c   :  { %v1965_v63 = vpop.eup %1964  ;;  %1410 = vst [vmem:[#allocation8 + $0x78] sm:$0xff] %v1963_v8  ;;  %1984 = vrcp.f32 %v1268_v56  ;;  %v2377_v31 = vadd.f32 %v1092_v29, %v2307_v53  ;;  %v1003_v33 = vpop.f32.mrb[61].mxu0 }
 0x27d   :  { %v1967_v30 = vpop.eup %1966  ;;  %1411 = vst [vmem:[#allocation8 + $0x80] sm:$0xff] %v1965_v63  ;;  %1986 = vpow2.f32 %v1577_v19  ;;  %v1725_v36 = vpop.f32.mrb[30].mxu1  ;;  %v2382_v39 = vadd.f32 %v1003_v33, %v2301_v41  ;;  %v1589_v19 = vmul.f32 -1.442695, %v2360_v12 }
 0x27e   :  { %v1969_v37 = vpop.eup %1968  ;;  %1415 = vst [vmem:[#allocation8 + $0xa0] sm:$0xff] %v1967_v30  ;;  %1988 = vpow2.f32 %v1578_v21  ;;  %v2385_v44 = vadd.f32 %v1725_v36, %v2307_v53  ;;  %v1005_v46 = vpop.f32.mrb[62].mxu0  ;;  %v1594_v30 = vmul.f32 -1.442695, %v2371_v27  ;;  %v1592_v36 = vmul.f32 -1.442695, %v2374_v32 }
 0x27f   :  { %v1095_v47 = vpop.f32.mrb[31].mxu1  ;;  %v1971_v48 = vpop.eup %1970  ;;  %v1273_v49 = vadd.f32 1.0, %v1969_v37  ;;  %1990 = vpow2.f32 %v1582_v22  ;;  %v2392_v59 = vadd.f32 %v1005_v46, %v2299_v40  ;;  %v1588_v34 = vmul.f32 -1.442695, %v2377_v31 }
 0x280   :  { %v1007_v51 = vpop.f32.mrb[63].mxu0  ;;  %v1973_v52 = vpop.eup %1972  ;;  %v1275_v54 = vadd.f32 1.0, %v1971_v48  ;;  %1992 = vpow2.f32 %v1580_v25  ;;  %v2395_v61 = vadd.f32 %v1095_v47, %v2307_v53  ;;  %v1584_v53 = vmul.f32 -1.442695, %v2346_v57 }
 0x281   :  { %v1975_v45 = vpop.eup %1974  ;;  %1994 = vrcp.f32 %v1273_v49  ;;  %v1276_v58 = vadd.f32 1.0, %v1973_v52  ;;  %v2398_v0 = vadd.f32 %v1007_v51, %v2301_v41  ;;  %v1597_v51 = vmul.f32 -1.442695, %v2385_v44 }
 0x282   :  { %v1977_v62 = vpop.eup %1976  ;;  %1413 = vst [vmem:[#allocation8 + $0x90] sm:$0xff] %v1975_v45  ;;  %1996 = vrcp.f32 %v1275_v54  ;;  %v1595_v52 = vmul.f32 -1.442695, %v2392_v59 }
 0x283   :  { %v1979_v2 = vpop.eup %1978  ;;  %1409 = vst [vmem:[#allocation8 + $0x70] sm:$0xff] %v1977_v62  ;;  %1998 = vrcp.f32 %v1276_v58 }
 0x284   :  { %v1981_v3 = vpop.eup %1980  ;;  %1414 = vst [vmem:[#allocation8 + $0x98] sm:$0xff] %v1979_v2  ;;  %2000 = vpow2.f32 %v1576_v38  ;;  %v1593_v38 = vmul.f32 -1.442695, %v2382_v39  ;;  %v1596_v39 = vmul.f32 -1.442695, %v2398_v0 }
 0x285   :  { %v1983_v40 = vpop.eup %1982  ;;  %1418 = vst [vmem:[#allocation8 + $0xb8] sm:$0xff] %v1981_v3  ;;  %2002 = vpow2.f32 %v1581_v35  ;;  %v1591_v35 = vmul.f32 -1.442695, %v2395_v61 }
 0x286   :  { %v1985_v5 = vpop.eup %1984  ;;  %1416 = vst [vmem:[#allocation8 + $0xa8] sm:$0xff] %v1983_v40  ;;  %2004 = vpow2.f32 %v1585_v42 }
 0x287   :  { %v1987_v7 = vpop.eup %1986  ;;  %1412 = vst [vmem:[#allocation8 + $0x88] sm:$0xff] %v1985_v5  ;;  %2006 = vpow2.f32 %v1583_v43 }
 0x288   :  { %v1989_v41 = vpop.eup %1988  ;;  %v1278_v9 = vadd.f32 1.0, %v1987_v7  ;;  %2008 = vpow2.f32 %v1579_v60 }
 0x289   :  { %v1991_v10 = vpop.eup %1990  ;;  %v1279_v11 = vadd.f32 1.0, %v1989_v41  ;;  %2010 = vpow2.f32 %v1584_v53 }
 0x28a   :  { %v1993_v4 = vpop.eup %1992  ;;  %2012 = vrcp.f32 %v1278_v9  ;;  %v1283_v13 = vadd.f32 1.0, %v1991_v10 }
 0x28b   :  { %v1995_v15 = vpop.eup %1994  ;;  %2014 = vrcp.f32 %v1279_v11  ;;  %v1281_v57 = vadd.f32 1.0, %v1993_v4 }
 0x28c   :  { %v1997_v18 = vpop.eup %1996  ;;  %1417 = vst [vmem:[#allocation8 + $0xb0] sm:$0xff] %v1995_v15  ;;  %2016 = vrcp.f32 %v1283_v13 }
 0x28d   :  { %v1999_v20 = vpop.eup %1998  ;;  %1419 = vst [vmem:[#allocation8 + $0xc0] sm:$0xff] %v1997_v18  ;;  %2018 = vrcp.f32 %v1281_v57 }
 0x28e   :  { %v2001_v56 = vpop.eup %2000  ;;  %1420 = vst [vmem:[#allocation8 + $0xc8] sm:$0xff] %v1999_v20  ;;  %2020 = vpow2.f32 %v1586_v14 }
 0x28f   :  { %v2003_v21 = vpop.eup %2002  ;;  %v1277_v8 = vadd.f32 1.0, %v2001_v56  ;;  %2022 = vpow2.f32 %v1587_v17 }
 0x290   :  { %v2005_v1 = vpop.eup %2004  ;;  %v1282_v22 = vadd.f32 1.0, %v2003_v21  ;;  %2024 = vpow2.f32 %v1589_v19 }
 0x291   :  { %v2007_v23 = vpop.eup %2006  ;;  %2026 = vrcp.f32 %v1277_v8  ;;  %v1286_v6 = vadd.f32 1.0, %v2005_v1 }
 0x292   :  { %v2009_v24 = vpop.eup %2008  ;;  %2028 = vrcp.f32 %v1282_v22  ;;  %v1284_v63 = vadd.f32 1.0, %v2007_v23 }
 0x293   :  { %v2011_v25 = vpop.eup %2010  ;;  %2030 = vrcp.f32 %v1286_v6  ;;  %v1280_v12 = vadd.f32 1.0, %v2009_v24 }
 0x294   :  { %v2013_v28 = vpop.eup %2012  ;;  %2032 = vrcp.f32 %v1284_v63  ;;  %v1285_v29 = vadd.f32 1.0, %v2011_v25 }
 0x295   :  { %v2015_v33 = vpop.eup %2014  ;;  %1422 = vst [vmem:[#allocation8 + $0xd8] sm:$0xff] %v2013_v28  ;;  %2034 = vrcp.f32 %v1280_v12 }
 0x296   :  { %v2017_v37 = vpop.eup %2016  ;;  %1423 = vst [vmem:[#allocation8 + $0xe0] sm:$0xff] %v2015_v33  ;;  %2036 = vrcp.f32 %v1285_v29 }
 0x297   :  { %v2019_v46 = vpop.eup %2018  ;;  %1427 = vst [vmem:[#allocation8 + $0x100] sm:$0xff] %v2017_v37  ;;  %2038 = vpow2.f32 %v1590_v26 }
 0x298   :  { %v2021_v47 = vpop.eup %2020  ;;  %1425 = vst [vmem:[#allocation8 + $0xf0] sm:$0xff] %v2019_v46  ;;  %2040 = vpow2.f32 %v1594_v30 }
 0x299   :  { %v2023_v16 = vpop.eup %2022  ;;  %v1287_v48 = vadd.f32 1.0, %v2021_v47  ;;  %2042 = vpow2.f32 %v1592_v36 }
 0x29a   :  { %v2025_v27 = vpop.eup %2024  ;;  %v1288_v49 = vadd.f32 1.0, %v2023_v16  ;;  %2044 = vpow2.f32 %v1588_v34 }
 0x29b   :  { %v2027_v32 = vpop.eup %2026  ;;  %2046 = vrcp.f32 %v1287_v48  ;;  %v1290_v50 = vadd.f32 1.0, %v2025_v27 }
 0x29c   :  { %v2029_v31 = vpop.eup %2028  ;;  %1421 = vst [vmem:[#allocation8 + $0xd0] sm:$0xff] %v2027_v32  ;;  %2048 = vrcp.f32 %v1288_v49 }
 0x29d   :  { %v2031_v54 = vpop.eup %2030  ;;  %1426 = vst [vmem:[#allocation8 + $0xf8] sm:$0xff] %v2029_v31  ;;  %2050 = vrcp.f32 %v1290_v50 }
 0x29e   :  { %v2033_v55 = vpop.eup %2032  ;;  %1430 = vst [vmem:[#allocation8 + $0x118] sm:$0xff] %v2031_v54  ;;  %2052 = vpow2.f32 %v1593_v38 }
 0x29f   :  { %v2035_v45 = vpop.eup %2034  ;;  %1428 = vst [vmem:[#allocation8 + $0x108] sm:$0xff] %v2033_v55  ;;  %2054 = vpow2.f32 %v1597_v51 }
 0x2a0   :  { %v2037_v58 = vpop.eup %2036  ;;  %1424 = vst [vmem:[#allocation8 + $0xe8] sm:$0xff] %v2035_v45  ;;  %2056 = vpow2.f32 %v1595_v52 }
 0x2a1   :  { %v2039_v44 = vpop.eup %2038  ;;  %1429 = vst [vmem:[#allocation8 + $0x110] sm:$0xff] %v2037_v58  ;;  %2058 = vpow2.f32 %v1591_v35 }
 0x2a2   :  { %v2041_v59 = vpop.eup %2040  ;;  %v1291_v62 = vadd.f32 1.0, %v2039_v44  ;;  %2060 = vpow2.f32 %v1596_v39 }
 0x2a3   :  { %v2043_v42 = vpop.eup %2042  ;;  %v1295_v2 = vadd.f32 1.0, %v2041_v59 }
 0x2a4   :  { %v2045_v61 = vpop.eup %2044  ;;  %2062 = vrcp.f32 %v1291_v62  ;;  %v1293_v43 = vadd.f32 1.0, %v2043_v42 }
 0x2a5   :  { %v2047_v3 = vpop.eup %2046  ;;  %2064 = vrcp.f32 %v1295_v2  ;;  %v1289_v0 = vadd.f32 1.0, %v2045_v61 }
 0x2a6   :  { %v2049_v60 = vpop.eup %2048  ;;  %1431 = vst [vmem:[#allocation8 + $0x120] sm:$0xff] %v2047_v3  ;;  %2066 = vrcp.f32 %v1293_v43 }
 0x2a7   :  { %v2051_v40 = vpop.eup %2050  ;;  %1432 = vst [vmem:[#allocation8 + $0x128] sm:$0xff] %v2049_v60  ;;  %2068 = vrcp.f32 %v1289_v0 }
 0x2a8   :  { %v2053_v53 = vpop.eup %2052  ;;  %1434 = vst [vmem:[#allocation8 + $0x138] sm:$0xff] %v2051_v40 }
 0x2a9   :  { %v2055_v5 = vpop.eup %2054  ;;  %v1294_v7 = vadd.f32 1.0, %v2053_v53 }
 0x2aa   :  { %v2057_v41 = vpop.eup %2056  ;;  %v1298_v9 = vadd.f32 1.0, %v2055_v5 }
 0x2ab   :  { %v2059_v10 = vpop.eup %2058  ;;  %2070 = vrcp.f32 %v1294_v7  ;;  %v1296_v11 = vadd.f32 1.0, %v2057_v41 }
 0x2ac   :  { %v2061_v4 = vpop.eup %2060  ;;  %2072 = vrcp.f32 %v1298_v9  ;;  %v1292_v13 = vadd.f32 1.0, %v2059_v10 }
 0x2ad   :  { %2074 = vrcp.f32 %v1296_v11  ;;  %v1297_v14 = vadd.f32 1.0, %v2061_v4 }
 0x2ae   :  { %v2063_v15 = vpop.eup %2062  ;;  %2076 = vrcp.f32 %v1292_v13 }
 0x2af   :  { %v2065_v57 = vpop.eup %2064  ;;  %1435 = vst [vmem:[#allocation8 + $0x140] sm:$0xff] %v2063_v15  ;;  %2078 = vrcp.f32 %v1297_v14 }
 0x2b0   :  { %v2067_v17 = vpop.eup %2066  ;;  %1439 = vst [vmem:[#allocation8 + $0x160] sm:$0xff] %v2065_v57 }
 0x2b1   :  { %v2069_v18 = vpop.eup %2068  ;;  %1437 = vst [vmem:[#allocation8 + $0x150] sm:$0xff] %v2067_v17 }
 0x2b2   :  { %1433 = vst [vmem:[#allocation8 + $0x130] sm:$0xff] %v2069_v18 }
 0x2b5   :  { %v2071_v19 = vpop.eup %2070 }
 0x2b6   :  { %v2073_v20 = vpop.eup %2072  ;;  %1438 = vst [vmem:[#allocation8 + $0x158] sm:$0xff] %v2071_v19 }
 0x2b7   :  { %v2075_v56 = vpop.eup %2074  ;;  %1442 = vst [vmem:[#allocation8 + $0x178] sm:$0xff] %v2073_v20 }
 0x2b8   :  { %v2077_v21 = vpop.eup %2076  ;;  %1440 = vst [vmem:[#allocation8 + $0x168] sm:$0xff] %v2075_v56 }
 0x2b9   :  { %v2079_v8 = vpop.eup %2078  ;;  %1436 = vst [vmem:[#allocation8 + $0x148] sm:$0xff] %v2077_v21 }
 0x2ba   :  { %1441 = vst [vmem:[#allocation8 + $0x170] sm:$0xff] %v2079_v8 }
 0x2bb   :  { %2157 = shalt.err (!%p2154_p0)
}
 0x2bc   :  { %s2158_s12 = scalar_lea.hbm %s2430_s5, 6144 }
 0x2bd   :  { %p2159_p1 = scmp.ne.s32.totalorder %s2430_s5, %s2158_s12  ;;  %p2162_p2 = scmp.lt.u32.totalorder %s2158_s12, %s2430_s5 }
 0x2bf   :  { %p2164_p3 = pnand %p2162_p2, %p2159_p1 }
 0x2c1   :  { %2167 = shalt.err (!%p2164_p3)
}
 0x2c2   :  { %s2182_s1 = smov 384   ;;  %s2183_s17 = smov 24  }
 0x2c3   :  { %1454 = dma.vmem_to_hbm [thread:$0]  %s1449_s8, 6144, %s2430_s5, [#allocation4], %s2182_s1, %s2182_s1, %s2183_s17  }
 0x2c4   :  { %2172 = dma.done.wait [#allocation4], 6144  }
 0x2c5   :  { %2173 = vsyncadd [#allocation4], 4294961152 }
 0x2c6   :  { %1458 = vsyncpa [#allocation3], 1 }
 0x2c7   :  { %1459 = vsyncpa [#allocation6], 1 }
 0x2c8   :  { %1460 = vsyncpa [#allocation4], 1 }

</bundles_post_ra>
